<compile_context>
chip_gen: v7x
topology: tpu7x:2x2x1
jax: 0.10.0
libtpu: 0.0.40
codegen_flags: <defaults>
</compile_context>

<pallas_src>
import jax
import jax.numpy as jnp
from jax.experimental import pallas as pl
from jax.experimental.pallas import tpu as pltpu


def _conv1x1_kernel(x_ref, w_ref, b_ref, o_ref):
    # x_ref: (1, tk, tn)    activation slab, spatial on lanes
    # w_ref: (C_out, tk)    weight K-slab (grid-invariant over n, s)
    # b_ref: (C_out, 1)     bias (broadcasts along lanes)
    # o_ref: (1, C_out, tn) lane-dense output block, accumulated over k
    partial = jnp.dot(w_ref[...], x_ref[0],
                      preferred_element_type=jnp.float32)

    @pl.when(pl.program_id(2) == 0)
    def _():
        o_ref[0] = (partial + b_ref[...]).astype(o_ref.dtype)

    @pl.when(pl.program_id(2) != 0)
    def _():
        o_ref[0] = (o_ref[0].astype(jnp.float32) + partial).astype(o_ref.dtype)


def _vmem_limit_bytes():
    """Per-generation scoped-VMEM limit: ~80 MiB on v5e/v6e (128 MiB physical),
    ~40 MiB on v7x (64 MiB physical)."""
    try:
        phys = int(getattr(pltpu.get_tpu_info(), "vmem_capacity_bytes"))
    except Exception:
        phys = 64 * 1024 * 1024  # conservative (v7x-sized) fallback
    return int(max(32 * 1024 * 1024, min(phys * 5 // 8, 96 * 1024 * 1024)))


def _pick_tiles(hw, c_in, c_out, n_batch, budget_bytes, max_lanes=32768):
    """Choose (tk, tn): the C_in contraction tile and the spatial lane tile."""
    # --- K tile: only split C_in when large AND exactly divisible ----------
    tk = c_in
    if c_in > 512:
        for cand in (512, 256, 128):
            if c_in % cand == 0:
                tk = cand
                break

    # --- spatial tile: double-buffered f32 residency per grid step ---------
    #   x block 2*tk*tn*4 + out block 2*c_out*tn*4 + w block 2*c_out*tk*4
    #   + bias 2*c_out*4   <= budget
    avail = budget_bytes // 8 - tk * c_out - c_out
    cap = max(128, avail // (tk + c_out))
    cap = min(cap, max_lanes)

    if hw <= 128:
        tn = hw                               # full-extent block (always legal)
    else:
        tn = min(cap, hw)
        if n_batch == 1:
            # v7x megacore: keep >= 2 spatial grid steps so both TCs get work.
            tn = min(tn, -(-hw // 2))
        tn = max(128, (tn // 128) * 128)      # lane-dense multiple of 128
    return tk, tn


def conv1x1_pallas(x_nchw, weight, bias):
    """1x1 convolution: x (N,C_in,H,W) f32, weight (C_out,C_in[,1,1]), bias (C_out,)."""
    N, C_in, H, W = x_nchw.shape
    C_out = weight.shape[0]
    HW = H * W

    x = x_nchw.reshape(N, C_in, HW).astype(jnp.float32)     # free view
    w = weight.reshape(C_out, C_in).astype(jnp.float32)
    b = bias.reshape(C_out, 1).astype(jnp.float32)

    vmem_limit = _vmem_limit_bytes()
    tk, tn = _pick_tiles(HW, C_in, C_out, N, int(vmem_limit * 0.85))

    s_tiles = -(-HW // tn)      # cdiv: partial last block masked on store
    k_tiles = -(-C_in // tk)    # exact by construction (tk | C_in or tk == C_in)

    out = pl.pallas_call(
        _conv1x1_kernel,
        out_shape=jax.ShapeDtypeStruct((N, C_out, HW), jnp.float32),
        grid_spec=pltpu.PrefetchScalarGridSpec(
            num_scalar_prefetch=0,
            grid=(N, s_tiles, k_tiles),
            in_specs=[
                pl.BlockSpec((1, tk, tn), lambda n, s, k: (n, k, s)),
                pl.BlockSpec((C_out, tk), lambda n, s, k: (0, k)),
                pl.BlockSpec((C_out, 1), lambda n, s, k: (0, 0)),
            ],
            out_specs=pl.BlockSpec((1, C_out, tn), lambda n, s, k: (n, 0, s)),
        ),
        compiler_params=pltpu.CompilerParams(
            dimension_semantics=("parallel", "parallel", "arbitrary"),
            vmem_limit_bytes=vmem_limit,
        ),
    )(x, w, b)

    # (N, C_out, H*W) -> (N, C_out, H, W): free reshape, no transpose.
    return out.reshape(N, C_out, H, W)


def init_params(key, in_channels, out_channels):
    """Deterministic init mirroring nn.Conv2d(kernel_size=1) shapes."""
    kw, kb = jax.random.split(key)
    bound = 1.0 / (in_channels ** 0.5)   # fan_in = C_in * 1 * 1
    weight = jax.random.uniform(
        kw, (out_channels, in_channels), jnp.float32, -bound, bound)
    bias = jax.random.uniform(
        kb, (out_channels,), jnp.float32, -bound, bound)
    return weight, bias


if __name__ == "__main__":
    key = jax.random.PRNGKey(0)
    k_x, k_p = jax.random.split(key)

    N, C_in, H, W = 2, 4, 16, 16
    C_out = 8

    x = jax.random.normal(k_x, (N, C_in, H, W), jnp.float32)
    weight, bias = init_params(k_p, C_in, C_out)

    out = conv1x1_pallas(x, weight, bias)
    out = jax.block_until_ready(out)

    # Reference (same math as F.conv2d with a 1x1 kernel), full-precision dot.
    ref = jnp.einsum("nchw,oc->nohw", x, weight,
                     precision=jax.lax.Precision.HIGHEST)
    ref = ref + bias[None, :, None, None]

    assert out.shape == (N, C_out, H, W)
    assert jnp.allclose(out, ref, atol=1e-4, rtol=1e-4)

    print("KERNEL_OK")
</pallas_src>

<mosaic_0001>
module attributes {stable_mosaic.version = 11 : i64} {
  func.func @_conv1x1_kernel(%arg0: i32, %arg1: i32, %arg2: i32, %arg3: memref<1x4x256xf32, #tpu.memory_space<vmem>>, %arg4: memref<8x4xf32, #tpu.memory_space<vmem>>, %arg5: memref<8x1xf32, #tpu.memory_space<vmem>>, %arg6: memref<1x8x256xf32, #tpu.memory_space<vmem>>) attributes {dimension_semantics = [#tpu.dimension_semantics<parallel>, #tpu.dimension_semantics<parallel>, #tpu.dimension_semantics<arbitrary>], iteration_bounds = array<i64: 2, 1, 1>, scalar_prefetch = 0 : i64, scratch_operands = 0 : i64, tpu.core_type = #tpu.core_type<tc>, window_params = [{transform_indices = @transform_0, window_bounds = array<i64: 1, 4, 256>}, {transform_indices = @transform_1, window_bounds = array<i64: 8, 4>}, {pipeline_mode = #tpu.pipeline_mode<synchronous>, transform_indices = @transform_2, window_bounds = array<i64: 8, 1>}, {transform_indices = @transform_3, window_bounds = array<i64: 1, 8, 256>}]} {
    %c0 = arith.constant 0 : index
    %c0_0 = arith.constant 0 : index
    %0 = vector.load %arg4[%c0, %c0_0] : memref<8x4xf32, #tpu.memory_space<vmem>>, vector<8x4xf32>
    %c0_1 = arith.constant 0 : index
    %c0_2 = arith.constant 0 : index
    %c0_3 = arith.constant 0 : index
    %1 = vector.load %arg3[%c0_1, %c0_2, %c0_3] : memref<1x4x256xf32, #tpu.memory_space<vmem>>, vector<1x4x256xf32>
    %2 = vector.shape_cast %1 : vector<1x4x256xf32> to vector<4x256xf32>
    %cst = arith.constant dense<0.000000e+00> : vector<8x256xf32>
    %3 = tpu.matmul %0, %2, %cst {dimension_numbers = #tpu.dot_dimension_numbers<[1], [0], [0], [1], [0, 0, 1, 1], [], []>} : vector<8x4xf32>, vector<4x256xf32>, vector<8x256xf32> -> vector<8x256xf32>
    %c0_i32 = arith.constant 0 : i32
    %4 = arith.cmpi eq, %arg2, %c0_i32 : i32
    %5 = arith.extui %4 : i1 to i32
    %c0_i32_4 = arith.constant 0 : i32
    %6 = arith.cmpi ne, %5, %c0_i32_4 : i32
    scf.if %6 {
      %c0_7 = arith.constant 0 : index
      %c0_8 = arith.constant 0 : index
      %10 = vector.load %arg5[%c0_7, %c0_8] : memref<8x1xf32, #tpu.memory_space<vmem>>, vector<8x1xf32>
      %11 = vector.broadcast %10 : vector<8x1xf32> to vector<8x256xf32>
      %12 = arith.addf %3, %11 : vector<8x256xf32>
      %c0_9 = arith.constant 0 : index
      %c0_10 = arith.constant 0 : index
      %c0_11 = arith.constant 0 : index
      %13 = vector.load %arg6[%c0_9, %c0_10, %c0_11] : memref<1x8x256xf32, #tpu.memory_space<vmem>>, vector<1x8x256xf32>
      %14 = vector.shape_cast %13 : vector<1x8x256xf32> to vector<8x256xf32>
      %15 = vector.shape_cast %12 : vector<8x256xf32> to vector<1x8x256xf32>
      tpu.vector_store %arg6[%c0_9, %c0_10, %c0_11], %15 {strides = array<i32>} : memref<1x8x256xf32, #tpu.memory_space<vmem>>, vector<1x8x256xf32>,
    } else {
    }
    %c0_i32_5 = arith.constant 0 : i32
    %7 = arith.cmpi ne, %arg2, %c0_i32_5 : i32
    %8 = arith.extui %7 : i1 to i32
    %c0_i32_6 = arith.constant 0 : i32
    %9 = arith.cmpi ne, %8, %c0_i32_6 : i32
    scf.if %9 {
      %c0_7 = arith.constant 0 : index
      %c0_8 = arith.constant 0 : index
      %c0_9 = arith.constant 0 : index
      %10 = vector.load %arg6[%c0_7, %c0_8, %c0_9] : memref<1x8x256xf32, #tpu.memory_space<vmem>>, vector<1x8x256xf32>
      %11 = vector.shape_cast %10 : vector<1x8x256xf32> to vector<8x256xf32>
      %12 = arith.addf %11, %3 : vector<8x256xf32>
      %c0_10 = arith.constant 0 : index
      %c0_11 = arith.constant 0 : index
      %c0_12 = arith.constant 0 : index
      %13 = vector.load %arg6[%c0_10, %c0_11, %c0_12] : memref<1x8x256xf32, #tpu.memory_space<vmem>>, vector<1x8x256xf32>
      %14 = vector.shape_cast %13 : vector<1x8x256xf32> to vector<8x256xf32>
      %15 = vector.shape_cast %12 : vector<8x256xf32> to vector<1x8x256xf32>
      tpu.vector_store %arg6[%c0_10, %c0_11, %c0_12], %15 {strides = array<i32>} : memref<1x8x256xf32, #tpu.memory_space<vmem>>, vector<1x8x256xf32>,
    } else {
    }
    return
  }
  func.func @transform_0(%arg0: i32, %arg1: i32, %arg2: i32) -> (i32, i32, i32) {
    %c0_i32 = arith.constant 0 : i32
    return %arg0, %arg2, %arg1 : i32, i32, i32
  }
  func.func @transform_1(%arg0: i32, %arg1: i32, %arg2: i32) -> (i32, i32) {
    %c0_i32 = arith.constant 0 : i32
    %c0_i32_0 = arith.constant 0 : i32
    return %c0_i32, %arg2 : i32, i32
  }
  func.func @transform_2(%arg0: i32, %arg1: i32, %arg2: i32) -> (i32, i32) {
    %c0_i32 = arith.constant 0 : i32
    %c0_i32_0 = arith.constant 0 : i32
    %c0_i32_1 = arith.constant 0 : i32
    return %c0_i32, %c0_i32_0 : i32, i32
  }
  func.func @transform_3(%arg0: i32, %arg1: i32, %arg2: i32) -> (i32, i32, i32) {
    %c0_i32 = arith.constant 0 : i32
    %c0_i32_0 = arith.constant 0 : i32
    return %arg0, %c0_i32, %arg1 : i32, i32, i32
  }
}

</mosaic_0001>

<bundles_post_ra>
// kernel: tpu_custom_call.1
= control target key start
LH: loop header
LB: loop body
LE: loop exit
PB: predicated region body
PF: predicated region fallthrough
CT: control target
= control target key end

     0   :  { %8 = vsyncpa [#allocation3], 0  ;;  %s762_s0 = inlined_call_operand.vmem [shape: f32[2,4,256], index: 0, kind: input, shape index: {}]   ;;  %s763_s1 = inlined_call_operand.vmem [shape: f32[8,4], index: 1, kind: input, shape index: {}]   ;;  %s764_s2 = inlined_call_operand.vmem [shape: f32[8,1], index: 2, kind: input, shape index: {}]   ;;  %s765_s3 = inlined_call_operand.hbm [shape: f32[2,8,256], index: 3, kind: output, shape index: {}]  }
   0x1   :  { %10 = vsyncpa [#allocation3 + $0x1], 0  ;;  %s644_s12 = smov 0   ;;  %s646_s13 = smov 0  }
   0x2   :  { %s648_s14 = smov 0   ;;  %s650_s15 = smov 0  }
   0x3   :  { %s652_s16 = smov 0   ;;  %s654_s17 = smov 0  }
   0x4 LB: > { %s463_s18 = sadd.s32 4294967295, %s619_s17   ;;  %s464_s19 = sadd.s32 4294967294, %s619_s17   ;;  %s619_s17 = sphi %s654_s17, %s16_s17   ;;  %s615_s16 = sphi %s652_s16, %s772_s16   ;;  %s611_s15 = sphi %s650_s15, %s771_s15   ;;  %s607_s14 = sphi %s648_s14, %s770_s14   ;;  %s603_s13 = sphi %s646_s13, %s769_s13   ;;  %s599_s12 = sphi %s644_s12, %s768_s12  }
   0x5   : > { %s35_s20 = sadd.s32 1, %s615_s16  ;;  %s121_s21 = sadd.s32 1, %s607_s14 }
   0x6   : > { %p37_p0 = scmp.ge.s32.totalorder %s35_s20, 2  ;;  %p131_p1 = scmp.ne.s32.totalorder %s607_s14, %s603_s13 }
   0x7   : > { %p132_p2 = scmp.eq.s32.totalorder %s463_s18, 1  ;;  %p137_p3 = scmp.ne.s32.totalorder %s603_s13, %s599_s12 }
   0x8   : > { %s774_s20 = smov (%p37_p0, %s35_s20), 0  ;;  %p138_p5 = scmp.eq.s32.totalorder %s464_s19, 1 }
   0x9   : > { %p684_p4 = por %p132_p2, %p131_p1  ;;  %s116_s23 = ssub.s32 %s615_s16, %s774_s20 }
   0xa   : > { %p468_p6 = scmp.ge.s32.totalorder %s619_s17, 1  ;;  %p119_p7 = scmp.eq.s32.totalorder %s116_s23, 0 }
   0xb   : > { %p691_p8 = por %p138_p5, %p137_p3  ;;  %p183_p9 = scmp.lt.s32.totalorder %s619_s17, 3 }
   0xc   : > { %s697_s25 = scalar_select %p119_p7, %s607_s14, %s121_s21  }
   0xd   : > { %p184_p10 = pnand %p468_p6, %p183_p9 }
   0xe   : > { %p220_p11 = scmp.lt.s32.totalorder (!%p184_p10), %s611_s15, 1  ;;  %v621_v0 = vmov (!%p184_p10), 0.0   ;;  %v622_v1 = vmov (!%p184_p10), 0   ;;  %v326_v2 = vld [vmem:[%s764_s2] sm:$0xff] (!%p184_p10)  ;;  %vm246_vm0 = vcmask (!%p184_p10), 1043456   ;;  %vm242_vm1 = vcmask (!%p184_p10), 31744  }
   0xf   : > { %187 = sbr.rel (%p184_p10) target bundleno = 260 (0x104), region = 32  ;;  %315 = vmatprep.mubr.f32.mxu0 (!%p184_p10), %v621_v0  ;;  %539 = vset.pattern.permute.xlu0 (!%p184_p10), %v622_v1  ;;  %v238_v5 = vld [vmem:[%s763_s1] sm:$0xff] (!%p184_p10)  ;;  %s216_s8 = sand.u32 (!%p184_p10), 1, %s603_s13  }
  0x10   : > { %329 = vperm.xlu0 (!%p184_p10), %539, %v326_v2   ;;  %s469_s9 = sshll.u32 (!%p184_p10), %s216_s8, 4  ;;  %s481_s10 = sshll.u32 (!%p184_p10), %s611_s15, 8 }
  0x11   : > { %s218_s11 = scalar_lea.vmem (!%p184_p10), [#allocation2], %s469_s9  ;;  %s715_s23 = scalar_lea.hbm (!%p184_p10), %s765_s3, %s481_s10 }
  0x12   : > { %s363_s18 = sshll.u32 (!%p184_p10), %s218_s11, 4  ;;  %s347_s26 = scalar_lea.sflag (!%p184_p10), [#allocation3], %s216_s8  ;;  %s717_s18 = int_to_ptr.vmem [resolvable:$true] %s363_s18 }
  0x13   : > { %s623_s27 = smov (!%p184_p10), [#allocation2]  }
  0x16   : > { %s221_s28 = scalar_select %p220_p11, %s611_s15, 1 }
  0x17   : > { %s541_s15 = scalar_lea.vmem %s717_s18, 256 }
  0x18   : > { %s480_s29 = sshll.u32 %s221_s28, 3  ;;  %p542_p12 = scmp.ne.s32.totalorder %s717_s18, %s541_s15 }
  0x19   : > { %s231_s5 = scalar_lea.vmem %s762_s0, %s480_s29  ;;  %s545_s28 = sshll.u32 %s623_s27, 4  ;;  %s546_s28 = int_to_ptr.vmem [resolvable:$false] %s545_s28 }
  0x1a   : > { %v239_v3 = vld [vmem:[%s231_s5] sm:$0xff]  ;;  %p543_p13 = pnand %p542_p12, %p684_p4  ;;  %s547_s29 = scalar_lea.vmem %s546_s28, 512 }
  0x1b   : > { %v241_v4 = vcombine.high %v239_v3, %v239_v3  ;;  %p548_p1 = scmp.lt.s32.totalorder %s717_s18, %s546_s28  ;;  %p549_p2 = scmp.lt.s32.totalorder %s547_s29, %s541_s15 }
  0x1c   : > { %p544_p0 = pneg %p543_p13 }
  0x1d   : > { %472 = vmatprep.subr.msk.mxu0 %vm246_vm0, %v241_v4  ;;  %p550_p3 = por %p549_p2, %p548_p1 }
  0x1e   : > { %473 = vmatpush1.msk.msra.mxu0 %vm246_vm0, %v239_v3 }
  0x1f   : > { %474 = vmatmul.mubr.msk.f32.vlgmr.msra.gmra.mrb[0].mxu0 %vm242_vm1, %v238_v5  ;;  %p551_p5 = pnand %p550_p3, %p544_p0 }
  0x8f   : > { %v330_v6 = vpop.permute.xlu0 %329 }
  0xf2   : > { %v317_v7 = vpop.f32.mrb[0].mxu0 }
  0xf3   : > { %v332_v8 = vadd.f32 %v330_v6, %v317_v7  ;;  %v319_v9 = vpop.f32.mrb[1].mxu0 }
  0xf4   : > { %v333_v10 = vadd.f32 %v330_v6, %v319_v9 }
  0xf5   : > { %334 = vst [vmem:[%s218_s11] sm:$0xff] %v332_v8 }
  0xf6   : > { %335 = vst [vmem:[%s218_s11 + $0x8] sm:$0xff] %v333_v10 }
  0xf7   : > { %554 = shalt.err (!%p551_p5)
}
  0xf8   : > { %s555_s30 = scalar_lea.hbm %s715_s23, 256  ;;  %s559_s6 = scalar_lea.hbm %s765_s3, 512 }
  0xf9   : > { %p556_p6 = scmp.ne.s32.totalorder %s715_s23, %s555_s30  ;;  %p560_p10 = scmp.lt.u32.totalorder %s715_s23, %s765_s3 }
  0xfa   : > { %p561_p11 = scmp.lt.u32.totalorder %s559_s6, %s555_s30  ;;  %p563_p13 = scmp.lt.u32.totalorder %s555_s30, %s715_s23 }
  0xfb   : > { %p557_p7 = pnand %p556_p6, %p684_p4 }
  0xfc   : > { %p562_p12 = por %p561_p11, %p560_p10 }
  0xfd   : > { %p558_p9 = pneg %p557_p7 }
  0xfe   : > { %p564_p0 = por %p563_p13, %p562_p12 }
 0x100   : > { %p565_p1 = pnand %p564_p0, %p558_p9 }
 0x102   : > { %568 = shalt.err (!%p565_p1)
}
 0x103   : > { %482 = dma.vmem_to_hbm [thread:$0]  (%p684_p4), %s717_s18, 256, %s715_s23, %s347_s26  }
 0x104 PF: > { %p488_p2 = scmp.ge.s32.totalorder %s619_s17, 2  ;;  %s375_s9 = sand.u32 1, %s599_s12  }
 0x105   : > { %s376_s10 = scalar_lea.sflag [#allocation3], %s375_s9 }
 0x106   : > { %p485_p3 = pnand %p488_p2, %p691_p8 }
 0x108   : > { %594 = dma.done.wait (!%p485_p3), %s376_s10, 256  }
 0x109   : > { %596 = vsyncadd (!%p485_p3), %s376_s10, 4294967040  ;;  %s16_s17 = sadd.s32 1, %s619_s17   ;;  %s768_s12 = smov %s603_s13 }
 0x10a   : > { %p13_p5 = scmp.ge.s32.totalorder %s16_s17, 4   ;;  %s769_s13 = smov %s607_s14 }
 0x10b   : > { %s770_s14 = smov %s697_s25  ;;  %s771_s15 = smov %s615_s16 }
 0x10c   : > { %s772_s16 = smov %s774_s20  ;;  %15 = sbr.rel (!%p13_p5) target bundleno = 4 (0x4), region = 78 }
 0x113   :  { %381 = vsyncpa [#allocation3], 1 }
 0x114   :  { %383 = vsyncpa [#allocation3 + $0x1], 1 }

</bundles_post_ra>
